<compile_context>
chip_gen: v5e
topology: v5e:2x2
jax: 0.10.0
libtpu: 0.0.40
codegen_flags: <defaults>
</compile_context>

<pallas_src>
import jax
import jax.numpy as jnp
from jax.experimental import pallas as pl
from jax.experimental.pallas import tpu as pltpu

H1 = 64        # logical hidden-1 width (nn.Linear(D, 64))
H1_PAD = 128   # padded hidden-1 lanes (lane-dense h1, K=128 for layer 2)
H2 = 128       # hidden-2 width (nn.Linear(64, 128))
LANE = 128     # padded output lane width (>= n_actions) for dense stores
TM_MAX = 1024  # max rows per grid step (per perf review: >= 1024)


def mlp_kernel(x_ref, w1_ref, b1_ref, w2_ref, b2_ref, w3_ref, b3_ref, o_ref):
    # One M-tile of the batch; whole MLP fused, everything resident in VMEM.
    x = x_ref[...].astype(jnp.bfloat16)                       # no-op if already bf16
    h1 = jnp.dot(x, w1_ref[...], preferred_element_type=jnp.float32)
    h1 = jnp.maximum(h1 + b1_ref[...], 0.0)
    h2 = jnp.dot(h1.astype(jnp.bfloat16), w2_ref[...],
                 preferred_element_type=jnp.float32)
    h2 = jnp.maximum(h2 + b2_ref[...], 0.0)
    h3 = jnp.dot(h2.astype(jnp.bfloat16), w3_ref[...],
                 preferred_element_type=jnp.float32)
    o_ref[...] = (h3 + b3_ref[...]).astype(o_ref.dtype)       # bf16 lane-dense store


def init_params(key, input_shape, n_actions):
    """Logical f32 params matching the nn.Linear shapes (stored as [in, out])."""
    D = input_shape[0] * input_shape[1]
    dims = [(D, H1), (H1, H2), (H2, n_actions)]
    params = []
    for fan_in, fan_out in dims:
        key, kw, kb = jax.random.split(key, 3)
        bound = 1.0 / jnp.sqrt(fan_in)
        w = jax.random.uniform(kw, (fan_in, fan_out), jnp.float32, -bound, bound)
        b = jax.random.uniform(kb, (1, fan_out), jnp.float32, -bound, bound)
        params += [w, b]
    return tuple(params)


def pack_params(params_f32):
    """f32 logical params -> kernel-ready params (do ONCE, not per call).

    * weights cast to bf16 (halves HBM->VMEM DMA)
    * hidden-1 padded 64->128 lanes (lane-dense h1; padded lanes are exactly 0)
    * last layer padded to 128 output lanes (unmasked lane-dense output store)
    """
    w1, b1, w2, b2, w3, b3 = params_f32
    D = w1.shape[0]
    n_actions = w3.shape[1]
    w1p = jnp.zeros((D, H1_PAD), jnp.float32).at[:, :H1].set(w1)
    b1p = jnp.zeros((1, H1_PAD), jnp.float32).at[:, :H1].set(b1)
    w2p = jnp.zeros((H1_PAD, H2), jnp.float32).at[:H1, :].set(w2)
    w3p = jnp.zeros((H2, LANE), jnp.float32).at[:, :n_actions].set(w3)
    b3p = jnp.zeros((1, LANE), jnp.float32).at[:, :n_actions].set(b3)
    return (w1p.astype(jnp.bfloat16), b1p.astype(jnp.float32),
            w2p.astype(jnp.bfloat16), b2.astype(jnp.float32),
            w3p.astype(jnp.bfloat16), b3p.astype(jnp.float32))


def _round_up(x, m):
    return ((x + m - 1) // m) * m


def dqn_forward_padded(xb, packed_params):
    """Hot path.  xb: [B, *input_shape] (f32 or bf16).

    Returns the PADDED bf16 output block [b_pad, 128] (b_pad >= B); consumers
    should index [:B, :n_actions] lazily / fuse downstream instead of paying
    an extra full-output slice copy.
    """
    w1, b1, w2, b2, w3, b3 = packed_params
    D = w1.shape[0]
    B = xb.shape[0]
    x2 = jnp.reshape(xb, (B, D))
    if x2.dtype not in (jnp.dtype('bfloat16'), jnp.dtype('float32')):
        x2 = x2.astype(jnp.float32)   # only non-float callers get upcast

    # --- adaptive M tiling -------------------------------------------------
    # B <= TM_MAX: a single full-extent tile (block == full dims, no padding).
    # B >  TM_MAX: >= 2 'parallel' grid steps (so v7x can shard across its two
    #              TensorCores), tile rounded to a multiple of 8 rows chosen to
    #              minimize padded rows.
    if B > TM_MAX:
        n_tiles = max(pl.cdiv(B, TM_MAX), 2)
        tm = _round_up(pl.cdiv(B, n_tiles), 8)
        b_pad = n_tiles * tm
    else:
        n_tiles = 1
        tm = B
        b_pad = B
    if b_pad != B:
        x2 = jnp.pad(x2, ((0, b_pad - B), (0, 0)))
    grid = (n_tiles,)

    def full(arr):
        return pl.BlockSpec(arr.shape, lambda i, _n=arr.ndim: (0,) * _n)

    flops = 2 * b_pad * (D * H1_PAD + H1_PAD * H2 + H2 * LANE)
    bytes_accessed = (x2.size * x2.dtype.itemsize
                      + (w1.size + w2.size + w3.size) * 2      # bf16 weights
                      + (b1.size + b2.size + b3.size) * 4      # f32 biases
                      + b_pad * LANE * 2)                       # bf16 output

    out = pl.pallas_call(
        mlp_kernel,
        out_shape=jax.ShapeDtypeStruct((b_pad, LANE), jnp.bfloat16),
        grid=grid,
        in_specs=[
            pl.BlockSpec((tm, D), lambda i: (i, 0)),
            full(w1), full(b1),
            full(w2), full(b2),
            full(w3), full(b3),
        ],
        out_specs=pl.BlockSpec((tm, LANE), lambda i: (i, 0)),
        compiler_params=pltpu.CompilerParams(
            dimension_semantics=("parallel",)),
        cost_estimate=pl.CostEstimate(
            flops=flops, transcendentals=0, bytes_accessed=bytes_accessed),
    )(x2, w1, b1, w2, b2, w3, b3)

    return out  # bf16 [b_pad, LANE]


def dqn_forward_batched(xb, packed_params, n_actions):
    """Convenience wrapper: [B, *input_shape] -> f32 [B, n_actions]."""
    B = xb.shape[0]
    out = dqn_forward_padded(xb, packed_params)
    return out[:B, :n_actions].astype(jnp.float32)


def dqn_forward(x, packed_params, n_actions):
    """Matches the PyTorch module: flatten a single state, return [n_actions].

    NOTE: at B=1 the call is launch/weight-DMA dominated; batch states
    upstream and use dqn_forward_padded for the hot path.
    """
    D = packed_params[0].shape[0]
    x_row = jnp.reshape(x, (1, D))
    return dqn_forward_padded(x_row, packed_params)[0, :n_actions].astype(jnp.float32)


def _ref_forward(x2, packed_params, n_actions):
    """Pure-JAX reference replicating the kernel math (bf16 weights, f32 acc,
    bf16 output store)."""
    w1, b1, w2, b2, w3, b3 = packed_params
    h = jnp.dot(x2.astype(jnp.bfloat16), w1, preferred_element_type=jnp.float32)
    h = jnp.maximum(h + b1, 0.0)
    h = jnp.dot(h.astype(jnp.bfloat16), w2, preferred_element_type=jnp.float32)
    h = jnp.maximum(h + b2, 0.0)
    o = jnp.dot(h.astype(jnp.bfloat16), w3, preferred_element_type=jnp.float32)
    o = (o + b3).astype(jnp.bfloat16)
    return o[:, :n_actions].astype(jnp.float32)


if __name__ == "__main__":
    input_shape = (4, 16)  # D = 64
    n_actions = 8

    key = jax.random.PRNGKey(0)
    key, kx, kb, kc = jax.random.split(key, 4)

    params_f32 = init_params(jax.random.PRNGKey(0), input_shape, n_actions)
    packed = pack_params(params_f32)

    # --- single-state path (matches the torch forward contract) -------------
    x = jax.random.normal(kx, input_shape, jnp.float32)
    out1 = jax.block_until_ready(dqn_forward(x, packed, n_actions))
    ref1 = _ref_forward(x.reshape(1, -1), packed, n_actions)[0]
    assert out1.shape == (n_actions,)
    assert jnp.allclose(out1, ref1, atol=2e-2, rtol=2e-2)

    # --- small batch: single full-extent tile, no padding --------------------
    B = 8
    xb = jax.random.normal(kb, (B,) + input_shape, jnp.float32)
    outb = jax.block_until_ready(dqn_forward_batched(xb, packed, n_actions))
    refb = _ref_forward(xb.reshape(B, -1), packed, n_actions)
    assert outb.shape == (B, n_actions)
    assert jnp.allclose(outb, refb, atol=2e-2, rtol=2e-2)

    # --- larger batch: exercises multi-tile path (2 parallel grid steps,
    #     adaptive tm = 552, minimal row padding) -----------------------------
    Bc = 1100
    xc = jax.random.normal(kc, (Bc,) + input_shape, jnp.float32)
    outc = jax.block_until_ready(dqn_forward_batched(xc, packed, n_actions))
    refc = _ref_forward(xc.reshape(Bc, -1), packed, n_actions)
    assert outc.shape == (Bc, n_actions)
    assert jnp.allclose(outc, refc, atol=2e-2, rtol=2e-2)

    print("KERNEL_OK")
</pallas_src>

<mosaic_0001>
module attributes {stable_mosaic.version = 11 : i64} {
  func.func @mlp_kernel(%arg0: i32, %arg1: memref<1x64xf32, #tpu.memory_space<vmem>>, %arg2: memref<64x128xbf16, #tpu.memory_space<vmem>>, %arg3: memref<1x128xf32, #tpu.memory_space<vmem>>, %arg4: memref<128x128xbf16, #tpu.memory_space<vmem>>, %arg5: memref<1x128xf32, #tpu.memory_space<vmem>>, %arg6: memref<128x128xbf16, #tpu.memory_space<vmem>>, %arg7: memref<1x128xf32, #tpu.memory_space<vmem>>, %arg8: memref<1x128xbf16, #tpu.memory_space<vmem>>) attributes {dimension_semantics = [#tpu.dimension_semantics<parallel>], iteration_bounds = array<i64: 1>, scalar_prefetch = 0 : i64, scratch_operands = 0 : i64, tpu.core_type = #tpu.core_type<tc>, window_params = [{transform_indices = @transform_0, window_bounds = array<i64: 1, 64>}, {pipeline_mode = #tpu.pipeline_mode<synchronous>, transform_indices = @transform_1, window_bounds = array<i64: 64, 128>}, {pipeline_mode = #tpu.pipeline_mode<synchronous>, transform_indices = @transform_2, window_bounds = array<i64: 1, 128>}, {pipeline_mode = #tpu.pipeline_mode<synchronous>, transform_indices = @transform_3, window_bounds = array<i64: 128, 128>}, {pipeline_mode = #tpu.pipeline_mode<synchronous>, transform_indices = @transform_4, window_bounds = array<i64: 1, 128>}, {pipeline_mode = #tpu.pipeline_mode<synchronous>, transform_indices = @transform_5, window_bounds = array<i64: 128, 128>}, {pipeline_mode = #tpu.pipeline_mode<synchronous>, transform_indices = @transform_6, window_bounds = array<i64: 1, 128>}, {transform_indices = @transform_7, window_bounds = array<i64: 1, 128>}]} {
    %c0 = arith.constant 0 : index
    %c0_0 = arith.constant 0 : index
    %0 = vector.load %arg1[%c0, %c0_0] : memref<1x64xf32, #tpu.memory_space<vmem>>, vector<1x64xf32>
    %1 = arith.truncf %0 : vector<1x64xf32> to vector<1x64xbf16>
    %c0_1 = arith.constant 0 : index
    %c0_2 = arith.constant 0 : index
    %2 = vector.load %arg2[%c0_1, %c0_2] : memref<64x128xbf16, #tpu.memory_space<vmem>>, vector<64x128xbf16>
    %cst = arith.constant dense<0.000000e+00> : vector<1x128xf32>
    %3 = tpu.matmul %1, %2, %cst {dimension_numbers = #tpu.dot_dimension_numbers<[1], [0], [0], [1], [0, 0, 1, 1], [], []>} : vector<1x64xbf16>, vector<64x128xbf16>, vector<1x128xf32> -> vector<1x128xf32>
    %c0_3 = arith.constant 0 : index
    %c0_4 = arith.constant 0 : index
    %4 = vector.load %arg3[%c0_3, %c0_4] : memref<1x128xf32, #tpu.memory_space<vmem>>, vector<1x128xf32>
    %5 = arith.addf %3, %4 : vector<1x128xf32>
    %cst_5 = arith.constant 0.000000e+00 : f32
    %6 = vector.broadcast %cst_5 : f32 to vector<1x128xf32>
    %7 = arith.maximumf %5, %6 : vector<1x128xf32>
    %8 = arith.truncf %7 : vector<1x128xf32> to vector<1x128xbf16>
    %c0_6 = arith.constant 0 : index
    %c0_7 = arith.constant 0 : index
    %9 = vector.load %arg4[%c0_6, %c0_7] : memref<128x128xbf16, #tpu.memory_space<vmem>>, vector<128x128xbf16>
    %cst_8 = arith.constant dense<0.000000e+00> : vector<1x128xf32>
    %10 = tpu.matmul %8, %9, %cst_8 {dimension_numbers = #tpu.dot_dimension_numbers<[1], [0], [0], [1], [0, 0, 1, 1], [], []>} : vector<1x128xbf16>, vector<128x128xbf16>, vector<1x128xf32> -> vector<1x128xf32>
    %c0_9 = arith.constant 0 : index
    %c0_10 = arith.constant 0 : index
    %11 = vector.load %arg5[%c0_9, %c0_10] : memref<1x128xf32, #tpu.memory_space<vmem>>, vector<1x128xf32>
    %12 = arith.addf %10, %11 : vector<1x128xf32>
    %cst_11 = arith.constant 0.000000e+00 : f32
    %13 = vector.broadcast %cst_11 : f32 to vector<1x128xf32>
    %14 = arith.maximumf %12, %13 : vector<1x128xf32>
    %15 = arith.truncf %14 : vector<1x128xf32> to vector<1x128xbf16>
    %c0_12 = arith.constant 0 : index
    %c0_13 = arith.constant 0 : index
    %16 = vector.load %arg6[%c0_12, %c0_13] : memref<128x128xbf16, #tpu.memory_space<vmem>>, vector<128x128xbf16>
    %cst_14 = arith.constant dense<0.000000e+00> : vector<1x128xf32>
    %17 = tpu.matmul %15, %16, %cst_14 {dimension_numbers = #tpu.dot_dimension_numbers<[1], [0], [0], [1], [0, 0, 1, 1], [], []>} : vector<1x128xbf16>, vector<128x128xbf16>, vector<1x128xf32> -> vector<1x128xf32>
    %c0_15 = arith.constant 0 : index
    %c0_16 = arith.constant 0 : index
    %18 = vector.load %arg7[%c0_15, %c0_16] : memref<1x128xf32, #tpu.memory_space<vmem>>, vector<1x128xf32>
    %19 = arith.addf %17, %18 : vector<1x128xf32>
    %20 = arith.truncf %19 : vector<1x128xf32> to vector<1x128xbf16>
    %c0_17 = arith.constant 0 : index
    %c0_18 = arith.constant 0 : index
    %21 = vector.load %arg8[%c0_17, %c0_18] : memref<1x128xbf16, #tpu.memory_space<vmem>>, vector<1x128xbf16>
    tpu.vector_store %arg8[%c0_17, %c0_18], %20 {strides = array<i32>} : memref<1x128xbf16, #tpu.memory_space<vmem>>, vector<1x128xbf16>,
    return
  }
  func.func @transform_0(%arg0: i32) -> (i32, i32) {
    %c0_i32 = arith.constant 0 : i32
    %c0_i32_0 = arith.constant 0 : i32
    return %arg0, %c0_i32 : i32, i32
  }
  func.func @transform_1(%arg0: i32) -> (i32, i32) {
    %c0_i32 = arith.constant 0 : i32
    %c0_i32_0 = arith.constant 0 : i32
    %c0_i32_1 = arith.constant 0 : i32
    return %c0_i32, %c0_i32_0 : i32, i32
  }
  func.func @transform_2(%arg0: i32) -> (i32, i32) {
    %c0_i32 = arith.constant 0 : i32
    %c0_i32_0 = arith.constant 0 : i32
    %c0_i32_1 = arith.constant 0 : i32
    return %c0_i32, %c0_i32_0 : i32, i32
  }
  func.func @transform_3(%arg0: i32) -> (i32, i32) {
    %c0_i32 = arith.constant 0 : i32
    %c0_i32_0 = arith.constant 0 : i32
    %c0_i32_1 = arith.constant 0 : i32
    return %c0_i32, %c0_i32_0 : i32, i32
  }
  func.func @transform_4(%arg0: i32) -> (i32, i32) {
    %c0_i32 = arith.constant 0 : i32
    %c0_i32_0 = arith.constant 0 : i32
    %c0_i32_1 = arith.constant 0 : i32
    return %c0_i32, %c0_i32_0 : i32, i32
  }
  func.func @transform_5(%arg0: i32) -> (i32, i32) {
    %c0_i32 = arith.constant 0 : i32
    %c0_i32_0 = arith.constant 0 : i32
    %c0_i32_1 = arith.constant 0 : i32
    return %c0_i32, %c0_i32_0 : i32, i32
  }
  func.func @transform_6(%arg0: i32) -> (i32, i32) {
    %c0_i32 = arith.constant 0 : i32
    %c0_i32_0 = arith.constant 0 : i32
    %c0_i32_1 = arith.constant 0 : i32
    return %c0_i32, %c0_i32_0 : i32, i32
  }
  func.func @transform_7(%arg0: i32) -> (i32, i32) {
    %c0_i32 = arith.constant 0 : i32
    %c0_i32_0 = arith.constant 0 : i32
    return %arg0, %c0_i32 : i32, i32
  }
}

</mosaic_0001>

<bundles_post_ra>
// kernel: tpu_custom_call.1
= control target key start
LH: loop header
LB: loop body
LE: loop exit
PB: predicated region body
PF: predicated region fallthrough
CT: control target
= control target key end

     0   :  { %12 = vsyncpa [#allocation3], 0  ;;  %s634_s0 = inlined_call_operand.hbm [shape: f32[1,64], index: 0, kind: input, shape index: {}]   ;;  %s635_s1 = inlined_call_operand.hbm [shape: bf16[64,128], index: 1, kind: input, shape index: {}]   ;;  %s636_s2 = inlined_call_operand.vmem [shape: f32[1,128], index: 2, kind: input, shape index: {}]   ;;  %s637_s3 = inlined_call_operand.hbm [shape: bf16[128,128], index: 3, kind: input, shape index: {}]   ;;  %s638_s4 = inlined_call_operand.vmem [shape: f32[1,128], index: 4, kind: input, shape index: {}]   ;;  %s639_s5 = inlined_call_operand.hbm [shape: bf16[128,128], index: 5, kind: input, shape index: {}]   ;;  %s640_s6 = inlined_call_operand.vmem [shape: f32[1,128], index: 6, kind: input, shape index: {}]   ;;  %s641_s7 = inlined_call_operand.hbm [shape: bf16[1,128], index: 7, kind: output, shape index: {}]  }
   0x1   :  { %13 = vsyncpa [#allocation6], 0 }
   0x2   :  { %14 = vsyncpa [#allocation9], 0  ;;  %s31_s26 = sshll.u32 %s635_s1, 4  ;;  %s32_s26 = int_to_ptr.hbm [resolvable:$true] %s31_s26 }
   0x3   :  { %15 = vsyncpa [#allocation4], 0  ;;  %s563_s27 = smov [#allocation5]   ;;  %s21_s8 = sshll.u32 %s634_s0, 4  ;;  %s22_s8 = int_to_ptr.hbm [resolvable:$true] %s21_s8 }
   0x4   :  { %s33_s28 = sshll.u32 %s563_s27, 4  ;;  %s564_s9 = smov 64   ;;  %s34_s28 = int_to_ptr.vmem [resolvable:$true] %s33_s28 }
   0x5   :  { %s565_s10 = smov 4   ;;  %s566_s11 = smov [#allocation2]  }
   0x6   :  { %39 = dma.hbm_to_vmem [thread:$0]  %s32_s26, 512, %s34_s28, [#allocation6], %s564_s9, %s564_s9, %s565_s10  }
   0x7   :  { %s23_s12 = sshll.u32 %s566_s11, 4  ;;  %s46_s15 = sshll.u32 %s637_s3, 4  ;;  %s24_s12 = int_to_ptr.vmem [resolvable:$true] %s23_s12  ;;  %s47_s15 = int_to_ptr.hbm [resolvable:$true] %s46_s15 }
   0x8   :  { %26 = dma.hbm_to_vmem [thread:$0]  %s22_s8, 16, %s24_s12, [#allocation3]  }
   0x9   :  { %s61_s17 = sshll.u32 %s639_s5, 4  ;;  %s567_s18 = smov [#allocation7]   ;;  %s62_s17 = int_to_ptr.hbm [resolvable:$true] %s61_s17 }
   0xa   :  { %s48_s19 = sshll.u32 %s567_s18, 4  ;;  %s568_s0 = smov [#allocation8]   ;;  %s49_s19 = int_to_ptr.vmem [resolvable:$true] %s48_s19 }
   0xb   :  { %54 = dma.hbm_to_vmem [thread:$0]  %s47_s15, 1024, %s49_s19, [#allocation6], %s564_s9, %s564_s9, %s565_s10  }
   0xc   :  { %s63_s20 = sshll.u32 %s568_s0, 4  ;;  %s64_s20 = int_to_ptr.vmem [resolvable:$true] %s63_s20 }
   0xd   :  { %69 = dma.hbm_to_vmem [thread:$0]  %s62_s17, 1024, %s64_s20, [#allocation9], %s564_s9, %s564_s9, %s565_s10  }
   0xe   :  { %555 = dma.done.wait [#allocation3], 16  }
   0xf   :  { %556 = vsyncadd [#allocation3], 4294967280 }
  0x10   :  { %557 = dma.done.wait [#allocation6], 1536  }
  0x11   :  { %558 = vsyncadd [#allocation6], 4294965760 }
  0x12   :  { %559 = dma.done.wait [#allocation9], 1024  }
  0x13   :  { %560 = vsyncadd [#allocation9], 4294966272  ;;  %v411_v0 = vld [vmem:[#allocation5 + $0x18] sm:$0xff]  ;;  %v410_v2 = vld [vmem:[#allocation5 + $0x10] sm:$0xff]  ;;  %vm124_vm0 = vcmask 523264   ;;  %vm302_vm1 = vcmask 1040384  }
  0x14   :  { %v419_v1 = vld [vmem:[#allocation7 + $0x38] sm:$0xff]  ;;  %132 = vmatpush.bf16.msra.mxu0 %v411_v0  ;;  %v418_v3 = vld [vmem:[#allocation7 + $0x30] sm:$0xff]  ;;  %v409_v4 = vld [vmem:[#allocation5 + $0x8] sm:$0xff]  ;;  %vm303_vm2 = vsmask.f32 256  ;;  %s569_s24 = smov [#allocation10]  }
  0x15   :  { %208 = vmatpush.bf16.msra.mxu1 %v419_v1  ;;  %v417_v5 = vld [vmem:[#allocation7 + $0x28] sm:$0xff]  ;;  %v408_v6 = vld [vmem:[#allocation5] sm:$0xff]  ;;  %v89_v7 = vld [vmem:[#allocation2] sm:$0x1]  ;;  %s313_s25 = sshll.u32 %s569_s24, 4  ;;  %s314_s25 = int_to_ptr.vmem [resolvable:$true] %s313_s25 }
  0x16   :  { %v416_v8 = vld [vmem:[#allocation7 + $0x20] sm:$0xff]  ;;  %v90_v9 = vpack.c.bf16 %v89_v7, %v89_v7  ;;  %v415_v10 = vld [vmem:[#allocation7 + $0x18] sm:$0xff]  ;;  %v414_v11 = vld [vmem:[#allocation7 + $0x10] sm:$0xff] }
  0x17   :  { %v413_v12 = vld [vmem:[#allocation7 + $0x8] sm:$0xff]  ;;  %v412_v13 = vld [vmem:[#allocation7] sm:$0xff]  ;;  %v427_v14 = vld [vmem:[#allocation8 + $0x38] sm:$0xff] }
  0x18   :  { %133 = vmatpush.bf16.msra.mxu0 %v410_v2  ;;  %288 = vmatpush.bf16.msra.mxu2 %v427_v14  ;;  %v426_v15 = vld [vmem:[#allocation8 + $0x30] sm:$0xff]  ;;  %v425_v16 = vld [vmem:[#allocation8 + $0x28] sm:$0xff]  ;;  %v424_v17 = vld [vmem:[#allocation8 + $0x20] sm:$0xff] }
  0x19   :  { %209 = vmatpush.bf16.msra.mxu1 %v418_v3  ;;  %v423_v18 = vld [vmem:[#allocation8 + $0x18] sm:$0xff]  ;;  %v422_v19 = vld [vmem:[#allocation8 + $0x10] sm:$0xff]  ;;  %v421_v26 = vld [vmem:[#allocation8 + $0x8] sm:$0xff] }
  0x1a   :  { %v99_v20 = vld [vmem:[%s636_s2] sm:$0x1]  ;;  %v420_v27 = vld [vmem:[#allocation8] sm:$0xff]  ;;  %vm304_vm3 = vmand %vm302_vm1, %vm303_vm2 }
  0x1b   :  { %v159_v28 = vld [vmem:[%s638_s4] sm:$0x1]  ;;  %s315_s4 = sshll.u32 %s641_s7, 4  ;;  %v305_v37 = vld [vmem:[#allocation10] sm:$0x1]  ;;  %s316_s4 = int_to_ptr.hbm [resolvable:$true] %s315_s4 }
  0x1c   :  { %134 = vmatpush.bf16.msra.mxu0 %v409_v4  ;;  %289 = vmatpush.bf16.msra.mxu2 %v426_v15  ;;  %v239_v34 = vld [vmem:[%s640_s6] sm:$0x1] }
  0x1d   :  { %210 = vmatpush.bf16.msra.mxu1 %v417_v5 }
  0x20   :  { %135 = vmatpush.bf16.msra.mxu0 %v408_v6  ;;  %290 = vmatpush.bf16.msra.mxu2 %v425_v16 }
  0x21   :  { %211 = vmatpush.bf16.msra.mxu1 %v416_v8 }
  0x23   :  { %343 = vmatmul.msk.bf16.vlgmr.msra.gmra.mxu0 %vm124_vm0, %v90_v9 }
  0x24   :  { %291 = vmatpush.bf16.msra.mxu2 %v424_v17 }
  0x25   :  { %212 = vmatpush.bf16.msra.mxu1 %v415_v10 }
  0x28   :  { %292 = vmatpush.bf16.msra.mxu2 %v423_v18 }
  0x29   :  { %213 = vmatpush.bf16.msra.mxu1 %v414_v11 }
  0x2c   :  { %293 = vmatpush.bf16.msra.mxu2 %v422_v19 }
  0x2d   :  { %214 = vmatpush.bf16.msra.mxu1 %v413_v12 }
  0x30   :  { %294 = vmatpush.bf16.msra.mxu2 %v421_v26 }
  0x31   :  { %215 = vmatpush.bf16.msra.mxu1 %v412_v13 }
  0x34   :  { %295 = vmatpush.bf16.msra.mxu2 %v420_v27 }
  0xa0   :  { %v137_v21 = vpop.f32.mrf.mxu0 }
  0xa1   :  { %v138_v22 = vadd.f32 %v137_v21, %v99_v20 }
  0xa3   :  { %v141_v23 = vmax.f32 %v138_v22, 0.0 }
  0xa5   :  { %v142_v24 = vpack.c.bf16 %v141_v23, %v141_v23 }
  0xa7   :  { %216 = vmatmul.bf16.vlgmr.msra.gmra.mxu1 %v142_v24 }
  0xa8   :  { %v139_v25 = vpop.f32.mrf.mxu0 }
 0x124   :  { %v217_v29 = vpop.f32.mrf.mxu1 }
 0x125   :  { %v218_v30 = vadd.f32 %v217_v29, %v159_v28 }
 0x127   :  { %v221_v31 = vmax.f32 %v218_v30, 0.0 }
 0x129   :  { %v222_v32 = vpack.c.bf16 %v221_v31, %v221_v31 }
 0x12b   :  { %296 = vmatmul.bf16.vlgmr.msra.gmra.mxu2 %v222_v32 }
 0x12c   :  { %v219_v33 = vpop.f32.mrf.mxu1 }
 0x1ae   :  { %v297_v35 = vpop.f32.mrf.mxu2 }
 0x1af   :  { %v298_v36 = vadd.f32 %v297_v35, %v239_v34 }
 0x1b1   :  { %v301_v38 = vpack.c.bf16 %v298_v36, %v298_v36 }
 0x1b3   :  { %v306_v39 = vsel %vm304_vm3, %v301_v38, %v305_v37 }
 0x1b4   :  { %307 = vst [vmem:[#allocation10] sm:$0x1] %v306_v39 }
 0x1b5   :  { %318 = dma.vmem_to_hbm [thread:$0]  %s314_s25, 16, %s316_s4, [#allocation4]  }
 0x1b6   :  { %v299_v40 = vpop.f32.mrf.mxu2 }
 0x1b7   :  { %561 = dma.done.wait [#allocation4], 16  }
 0x1b8   :  { %562 = vsyncadd [#allocation4], 4294967280 }
 0x1b9   :  { %323 = vsyncpa [#allocation3], 1 }
 0x1ba   :  { %324 = vsyncpa [#allocation6], 1 }
 0x1bb   :  { %325 = vsyncpa [#allocation9], 1 }
 0x1bc   :  { %326 = vsyncpa [#allocation4], 1 }

</bundles_post_ra>
